<compile_context>
chip_gen: v6e
topology: v6e:2x2x1
jax: 0.10.0
libtpu: 0.0.40
codegen_flags: <defaults>
</compile_context>

<pallas_src>
import math

import jax
import jax.numpy as jnp
from jax import lax
from jax.experimental import pallas as pl
from jax.experimental.pallas import tpu as pltpu


def _round_up(x: int, m: int) -> int:
    return (x + m - 1) // m * m


def valuenet_kernel(x_ref, w1_ref, b1_ref, w2_ref, b2_ref, w3_ref, b3_ref, o_ref):
    # x arrives f32 from HBM; cast to bf16 in-register so the MXU sees bf16 x bf16
    # (single-pass on v5e's 4x128^2 and v6e/v7x's 2x256^2 arrays).
    x = x_ref[...].astype(jnp.bfloat16)                                 # (TB, S)

    # fc1: f32 accumulate, bias + ReLU in f32, then bf16 for the next MXU op.
    h1 = jnp.dot(x, w1_ref[...], preferred_element_type=jnp.float32) + b1_ref[...]
    h1 = jnp.maximum(h1, 0.0).astype(jnp.bfloat16)                      # (TB, 64)

    # fc2
    h2 = jnp.dot(h1, w2_ref[...], preferred_element_type=jnp.float32) + b2_ref[...]
    h2 = jnp.maximum(h2, 0.0).astype(jnp.bfloat16)                      # (TB, 64)

    # fc3 as (1,64) x (TB,64)^T -> (1,TB): batch lands in the lane dimension so the
    # output store is a full-lane vst.  (If a bundle dump ever shows a vxpose of h2
    # here, swap to a VPU/XLU reduction — fc3 is <2% of the FLOPs either way.)
    v = lax.dot_general(
        w3_ref[...], h2,
        dimension_numbers=(((1,), (1,)), ((), ())),
        preferred_element_type=jnp.float32,
    ) + b3_ref[...]                                                     # (1, TB) f32

    o_ref[...] = v.astype(o_ref.dtype)                                  # (1, TB)


def value_net_forward_pallas(state, params, *, block_rows: int = 4096):
    """state: (B, stateDim) float32. Returns (B, 1) float32. Pallas kernel path."""
    w1, b1, w2, b2, w3, b3 = params
    B, S = state.shape

    # bf16 MXU operands; weights are tiny, cast once per call (constant-folds under jit).
    w1b = w1.astype(jnp.bfloat16)
    w2b = w2.astype(jnp.bfloat16)
    w3b = w3.astype(jnp.bfloat16)

    # Tile: multiple of 128 (lane-dense output blocks), capped at block_rows, and no
    # larger than ceil(B/2) so the parallel grid keeps >=2 steps (v7x: two TensorCores).
    TB = min(_round_up(int(block_rows), 128), max(128, _round_up(pl.cdiv(B, 2), 128)))
    grid = (pl.cdiv(B, TB),)   # ragged tail -> Pallas masked final-block load/store

    def resident(a):
        nd = a.ndim
        return pl.BlockSpec(a.shape, lambda i: (0,) * nd)

    out = pl.pallas_call(
        valuenet_kernel,
        out_shape=jax.ShapeDtypeStruct((1, B), jnp.float32),
        grid=grid,
        in_specs=[
            pl.BlockSpec((TB, S), lambda i: (i, 0)),   # x: batch-tiled, ingested f32
            resident(w1b), resident(b1),               # weights/biases: VMEM-resident
            resident(w2b), resident(b2),
            resident(w3b), resident(b3),
        ],
        out_specs=pl.BlockSpec((1, TB), lambda i: (0, i)),   # lane-dense output blocks
        compiler_params=pltpu.CompilerParams(
            dimension_semantics=("parallel",),          # shard batch grid over TCs (v7x)
            vmem_limit_bytes=32 * 1024 * 1024,          # safe on v5e/v6e (128 MiB) and v7x (64 MiB)
        ),
    )(state, w1b, b1, w2b, b2, w3b, b3)

    return out.reshape(B, 1)                            # torch-style (B, 1); no slice copy


def value_net_ref(state, params):
    """Pure-JAX f32 reference (and the small-batch fast path)."""
    w1, b1, w2, b2, w3, b3 = params
    x = jnp.maximum(state @ w1 + b1, 0.0)
    x = jnp.maximum(x @ w2 + b2, 0.0)
    return x @ w3.T + b3


def value_net_ref_bf16(state, params):
    """Reference mimicking the kernel's mixed precision (bf16 operands, f32 accum)."""
    w1, b1, w2, b2, w3, b3 = params
    bf = jnp.bfloat16
    x = state.astype(bf)
    h1 = jnp.maximum(
        jnp.dot(x, w1.astype(bf), preferred_element_type=jnp.float32) + b1, 0.0).astype(bf)
    h2 = jnp.maximum(
        jnp.dot(h1, w2.astype(bf), preferred_element_type=jnp.float32) + b2, 0.0).astype(bf)
    return jnp.dot(h2, w3.astype(bf).T, preferred_element_type=jnp.float32) + b3


def value_net_forward(state, params, *, min_pallas_rows: int = 512, block_rows: int = 4096):
    """Dispatch: tiny batches go to fused XLA dots; large batches use the Pallas kernel."""
    if state.shape[0] < min_pallas_rows:
        return value_net_ref(state.astype(jnp.float32), params)
    return value_net_forward_pallas(state, params, block_rows=block_rows)


def init_params(key, state_dim):
    """torch.nn.Linear default init, U(-1/sqrt(fan_in), +1/sqrt(fan_in)).

    fc1/fc2 weights stored as (in, out) so the kernel computes x @ W;
    fc3 weight stored torch-style as (1, 64); biases as (1, out)."""
    def linear(key, fan_in, fan_out, transpose):
        kw, kb = jax.random.split(key)
        bound = 1.0 / math.sqrt(fan_in)
        shape = (fan_in, fan_out) if transpose else (fan_out, fan_in)
        w = jax.random.uniform(kw, shape, jnp.float32, -bound, bound)
        b = jax.random.uniform(kb, (1, fan_out), jnp.float32, -bound, bound)
        return w, b

    k1, k2, k3 = jax.random.split(key, 3)
    w1, b1 = linear(k1, state_dim, 64, transpose=True)   # (32, 64), (1, 64)
    w2, b2 = linear(k2, 64, 64, transpose=True)          # (64, 64), (1, 64)
    w3, b3 = linear(k3, 64, 1, transpose=False)          # (1, 64),  (1, 1)
    return (w1, b1, w2, b2, w3, b3)


if __name__ == "__main__":
    key = jax.random.PRNGKey(0)
    k_params, k_state = jax.random.split(key)

    STATE_DIM = 32
    BATCH = 200  # not a multiple of the tile -> exercises the 2-step grid + masked tail block

    params = init_params(k_params, STATE_DIM)
    state = jax.random.normal(k_state, (BATCH, STATE_DIM), jnp.float32)

    # Small tile here so the test covers a multi-step grid with a ragged final block.
    out = value_net_forward_pallas(state, params, block_rows=128)
    out = jax.block_until_ready(out)

    assert out.shape == (BATCH, 1), out.shape

    # Compare against the mixed-precision reference (tight) and the f32 reference (loose).
    ref_bf16 = value_net_ref_bf16(state, params)
    ref_f32 = value_net_ref(state, params)
    err_bf16 = float(jnp.max(jnp.abs(out - ref_bf16)))
    err_f32 = float(jnp.max(jnp.abs(out - ref_f32)))
    assert bool(jnp.allclose(out, ref_bf16, atol=2e-2, rtol=2e-2)), err_bf16
    assert bool(jnp.allclose(out, ref_f32, atol=5e-2, rtol=5e-2)), err_f32

    print("KERNEL_OK")
</pallas_src>

<mosaic_0001>
module attributes {stable_mosaic.version = 11 : i64} {
  func.func @valuenet_kernel(%arg0: i32, %arg1: memref<128x32xf32, #tpu.memory_space<vmem>>, %arg2: memref<32x64xbf16, #tpu.memory_space<vmem>>, %arg3: memref<1x64xf32, #tpu.memory_space<vmem>>, %arg4: memref<64x64xbf16, #tpu.memory_space<vmem>>, %arg5: memref<1x64xf32, #tpu.memory_space<vmem>>, %arg6: memref<1x64xbf16, #tpu.memory_space<vmem>>, %arg7: memref<1x1xf32, #tpu.memory_space<vmem>>, %arg8: memref<1x128xf32, #tpu.memory_space<vmem>>) attributes {dimension_semantics = [#tpu.dimension_semantics<parallel>], iteration_bounds = array<i64: 2>, scalar_prefetch = 0 : i64, scratch_operands = 0 : i64, tpu.core_type = #tpu.core_type<tc>, window_params = [{transform_indices = @transform_0, window_bounds = array<i64: 128, 32>}, {pipeline_mode = #tpu.pipeline_mode<synchronous>, transform_indices = @transform_1, window_bounds = array<i64: 32, 64>}, {pipeline_mode = #tpu.pipeline_mode<synchronous>, transform_indices = @transform_2, window_bounds = array<i64: 1, 64>}, {pipeline_mode = #tpu.pipeline_mode<synchronous>, transform_indices = @transform_3, window_bounds = array<i64: 64, 64>}, {pipeline_mode = #tpu.pipeline_mode<synchronous>, transform_indices = @transform_4, window_bounds = array<i64: 1, 64>}, {pipeline_mode = #tpu.pipeline_mode<synchronous>, transform_indices = @transform_5, window_bounds = array<i64: 1, 64>}, {pipeline_mode = #tpu.pipeline_mode<synchronous>, transform_indices = @transform_6, window_bounds = array<i64: 1, 1>}, {transform_indices = @transform_7, window_bounds = array<i64: 1, 128>}]} {
    %c0 = arith.constant 0 : index
    %c0_0 = arith.constant 0 : index
    %0 = vector.load %arg1[%c0, %c0_0] : memref<128x32xf32, #tpu.memory_space<vmem>>, vector<128x32xf32>
    %1 = arith.truncf %0 : vector<128x32xf32> to vector<128x32xbf16>
    %c0_1 = arith.constant 0 : index
    %c0_2 = arith.constant 0 : index
    %2 = vector.load %arg2[%c0_1, %c0_2] : memref<32x64xbf16, #tpu.memory_space<vmem>>, vector<32x64xbf16>
    %cst = arith.constant dense<0.000000e+00> : vector<128x64xf32>
    %3 = tpu.matmul %1, %2, %cst {dimension_numbers = #tpu.dot_dimension_numbers<[1], [0], [0], [1], [0, 0, 1, 1], [], []>} : vector<128x32xbf16>, vector<32x64xbf16>, vector<128x64xf32> -> vector<128x64xf32>
    %c0_3 = arith.constant 0 : index
    %c0_4 = arith.constant 0 : index
    %4 = vector.load %arg3[%c0_3, %c0_4] : memref<1x64xf32, #tpu.memory_space<vmem>>, vector<1x64xf32>
    %5 = vector.broadcast %4 : vector<1x64xf32> to vector<128x64xf32>
    %6 = arith.addf %3, %5 : vector<128x64xf32>
    %cst_5 = arith.constant 0.000000e+00 : f32
    %7 = vector.broadcast %cst_5 : f32 to vector<128x64xf32>
    %8 = arith.maximumf %6, %7 : vector<128x64xf32>
    %9 = arith.truncf %8 : vector<128x64xf32> to vector<128x64xbf16>
    %c0_6 = arith.constant 0 : index
    %c0_7 = arith.constant 0 : index
    %10 = vector.load %arg4[%c0_6, %c0_7] : memref<64x64xbf16, #tpu.memory_space<vmem>>, vector<64x64xbf16>
    %cst_8 = arith.constant dense<0.000000e+00> : vector<128x64xf32>
    %11 = tpu.matmul %9, %10, %cst_8 {dimension_numbers = #tpu.dot_dimension_numbers<[1], [0], [0], [1], [0, 0, 1, 1], [], []>} : vector<128x64xbf16>, vector<64x64xbf16>, vector<128x64xf32> -> vector<128x64xf32>
    %c0_9 = arith.constant 0 : index
    %c0_10 = arith.constant 0 : index
    %12 = vector.load %arg5[%c0_9, %c0_10] : memref<1x64xf32, #tpu.memory_space<vmem>>, vector<1x64xf32>
    %13 = vector.broadcast %12 : vector<1x64xf32> to vector<128x64xf32>
    %14 = arith.addf %11, %13 : vector<128x64xf32>
    %cst_11 = arith.constant 0.000000e+00 : f32
    %15 = vector.broadcast %cst_11 : f32 to vector<128x64xf32>
    %16 = arith.maximumf %14, %15 : vector<128x64xf32>
    %17 = arith.truncf %16 : vector<128x64xf32> to vector<128x64xbf16>
    %c0_12 = arith.constant 0 : index
    %c0_13 = arith.constant 0 : index
    %18 = vector.load %arg6[%c0_12, %c0_13] : memref<1x64xbf16, #tpu.memory_space<vmem>>, vector<1x64xbf16>
    %cst_14 = arith.constant dense<0.000000e+00> : vector<1x128xf32>
    %19 = tpu.matmul %18, %17, %cst_14 {dimension_numbers = #tpu.dot_dimension_numbers<[1], [1], [0], [0], [0, 0, 1, 0], [], []>} : vector<1x64xbf16>, vector<128x64xbf16>, vector<1x128xf32> -> vector<1x128xf32>
    %c0_15 = arith.constant 0 : index
    %c0_16 = arith.constant 0 : index
    %20 = vector.load %arg7[%c0_15, %c0_16] : memref<1x1xf32, #tpu.memory_space<vmem>>, vector<1x1xf32>
    %21 = vector.broadcast %20 : vector<1x1xf32> to vector<1x128xf32>
    %22 = arith.addf %19, %21 : vector<1x128xf32>
    %c0_17 = arith.constant 0 : index
    %c0_18 = arith.constant 0 : index
    %23 = vector.load %arg8[%c0_17, %c0_18] : memref<1x128xf32, #tpu.memory_space<vmem>>, vector<1x128xf32>
    tpu.vector_store %arg8[%c0_17, %c0_18], %22 {strides = array<i32>} : memref<1x128xf32, #tpu.memory_space<vmem>>, vector<1x128xf32>,
    return
  }
  func.func @transform_0(%arg0: i32) -> (i32, i32) {
    %c0_i32 = arith.constant 0 : i32
    %c0_i32_0 = arith.constant 0 : i32
    return %arg0, %c0_i32 : i32, i32
  }
  func.func @transform_1(%arg0: i32) -> (i32, i32) {
    %c0_i32 = arith.constant 0 : i32
    %c0_i32_0 = arith.constant 0 : i32
    %c0_i32_1 = arith.constant 0 : i32
    return %c0_i32, %c0_i32_0 : i32, i32
  }
  func.func @transform_2(%arg0: i32) -> (i32, i32) {
    %c0_i32 = arith.constant 0 : i32
    %c0_i32_0 = arith.constant 0 : i32
    %c0_i32_1 = arith.constant 0 : i32
    return %c0_i32, %c0_i32_0 : i32, i32
  }
  func.func @transform_3(%arg0: i32) -> (i32, i32) {
    %c0_i32 = arith.constant 0 : i32
    %c0_i32_0 = arith.constant 0 : i32
    %c0_i32_1 = arith.constant 0 : i32
    return %c0_i32, %c0_i32_0 : i32, i32
  }
  func.func @transform_4(%arg0: i32) -> (i32, i32) {
    %c0_i32 = arith.constant 0 : i32
    %c0_i32_0 = arith.constant 0 : i32
    %c0_i32_1 = arith.constant 0 : i32
    return %c0_i32, %c0_i32_0 : i32, i32
  }
  func.func @transform_5(%arg0: i32) -> (i32, i32) {
    %c0_i32 = arith.constant 0 : i32
    %c0_i32_0 = arith.constant 0 : i32
    %c0_i32_1 = arith.constant 0 : i32
    return %c0_i32, %c0_i32_0 : i32, i32
  }
  func.func @transform_6(%arg0: i32) -> (i32, i32) {
    %c0_i32 = arith.constant 0 : i32
    %c0_i32_0 = arith.constant 0 : i32
    %c0_i32_1 = arith.constant 0 : i32
    return %c0_i32, %c0_i32_0 : i32, i32
  }
  func.func @transform_7(%arg0: i32) -> (i32, i32) {
    %c0_i32 = arith.constant 0 : i32
    %c0_i32_0 = arith.constant 0 : i32
    return %c0_i32, %arg0 : i32, i32
  }
}

</mosaic_0001>

<bundles_post_ra>
// kernel: tpu_custom_call.1
= control target key start
LH: loop header
LB: loop body
LE: loop exit
PB: predicated region body
PF: predicated region fallthrough
CT: control target
= control target key end

     0   :  { %s1308_s0 = inlined_call_operand.vmem [shape: f32[200,32], index: 0, kind: input, shape index: {}]   ;;  %s1309_s1 = inlined_call_operand.vmem [shape: bf16[32,64], index: 1, kind: input, shape index: {}]   ;;  %s1310_s2 = inlined_call_operand.vmem [shape: f32[1,64], index: 2, kind: input, shape index: {}]   ;;  %s1311_s3 = inlined_call_operand.vmem [shape: bf16[64,64], index: 3, kind: input, shape index: {}]   ;;  %s1312_s4 = inlined_call_operand.vmem [shape: f32[1,64], index: 4, kind: input, shape index: {}]   ;;  %s1313_s5 = inlined_call_operand.vmem [shape: bf16[1,64], index: 5, kind: input, shape index: {}]   ;;  %s1314_s6 = inlined_call_operand.<no memory space> [shape: f32[1,1], index: 6, kind: input, shape index: {}]   ;;  %s1315_s7 = inlined_call_operand.hbm [shape: f32[1,200], index: 7, kind: output, shape index: {}]  }
   0x1   :  { %v12_v0 = vstv %s1314_s6 }
   0x2   :  { %13 = vst [vmem:[#allocation2] sm:$0x1] %v12_v0 }
   0x3   :  { %14 = vsyncpa [#allocation4], 0 }
   0x4   :  { %16 = vsyncpa [#allocation4 + $0x1], 0  ;;  %s1113_s26 = smov 0   ;;  %s1115_s27 = smov 0  }
   0x5   :  { %s1117_s28 = smov 0   ;;  %s1119_s29 = smov 0  }
   0x6 LB: > { %s825_s6 = sadd.s32 4294967295, %s1064_s29   ;;  %s826_s30 = sadd.s32 4294967294, %s1064_s29   ;;  %s1064_s29 = sphi %s1119_s29, %s1321_s29   ;;  %s1060_s28 = sphi %s1117_s28, %s1320_s28   ;;  %s1056_s27 = sphi %s1115_s27, %s1319_s27   ;;  %s1052_s26 = sphi %s1113_s26, %s1318_s26  }
   0x7   : > { %s1136_s8 = sadd.s32 1, %s1064_s29   ;;  %s181_s9 = sadd.s32 1, %s1060_s28 }
   0x8   : > { %s178_s10 = ssub.s32 %s1064_s29, %s1136_s8  ;;  %p191_p0 = scmp.ne.s32.totalorder %s1060_s28, %s1056_s27 }
   0x9   : > { %p179_p1 = scmp.eq.s32.totalorder %s178_s10, 0  ;;  %p192_p2 = scmp.eq.s32.totalorder %s825_s6, 1 }
   0xa   : > { %p197_p3 = scmp.ne.s32.totalorder %s1056_s27, %s1052_s26  ;;  %p198_p4 = scmp.eq.s32.totalorder %s826_s30, 1 }
   0xb   : > { %s1146_s11 = scalar_select %p179_p1, %s1060_s28, %s181_s9  }
   0xc   : > { %p1148_p5 = por %p192_p2, %p191_p0  ;;  %p1152_p6 = por %p198_p4, %p197_p3 }
   0xd   : > { %p829_p7 = scmp.ge.s32.totalorder %s1064_s29, 1  ;;  %p251_p8 = scmp.lt.s32.totalorder %s1064_s29, 3 }
   0xf   : > { %p252_p9 = pnand %p829_p7, %p251_p8 }
  0x10   : > { %s1161_s16 = sshll.u32 (!%p252_p9), %s825_s6, 4  ;;  %s284_s23 = sand.u32 (!%p252_p9), 1, %s1056_s27  }
  0x11   : > { %255 = sbr.rel (%p252_p9) target bundleno = 737 (0x2e1), region = 48  ;;  %p291_p10 = scmp.lt.s32.totalorder (!%p252_p9), %s1161_s16, 24 }
  0x12   : > { %s285_s24 = scalar_lea.vmem (!%p252_p9), [#allocation3], %s284_s23  ;;  %s1267_s9 = scalar_lea.hbm (!%p252_p9), %s1315_s7, %s1161_s16 }
  0x13   : > { %s759_s10 = scalar_lea.sflag (!%p252_p9), [#allocation4], %s284_s23  ;;  %s1069_s15 = smov (!%p252_p9), [#allocation3]  }
  0x14   : > { %s1008_s17 = sshll.u32 (!%p252_p9), %s1069_s15, 4  ;;  %s1009_s17 = int_to_ptr.vmem [resolvable:$false] %s1008_s17 }
  0x15   : > { %s1010_s18 = scalar_lea.vmem (!%p252_p9), %s1009_s17, 32 }
  0x16   : > { %v998_v1 = vld [vmem:[%s1309_s1 + $0x8] sm:$0xff]   ;;  %v999_v2 = vld [vmem:[%s1309_s1] sm:$0xff]   ;;  %s292_s19 = scalar_select %p291_p10, %s1161_s16, 24  ;;  %v1000_v3 = vld [vmem:[%s1311_s3 + $0x18] sm:$0xff]   ;;  %vm348_vm0 = vcmask 261120   ;;  %vm533_vm1 = vcmask 523264  }
  0x17   : > { %891 = vmatprep.subr.bf16.mxu1 %v998_v1  ;;  %v1001_v13 = vld [vmem:[%s1311_s3 + $0x10] sm:$0xff]   ;;  %v1002_v18 = vld [vmem:[%s1311_s3 + $0x8] sm:$0xff]   ;;  %v1003_v30 = vld [vmem:[%s1311_s3] sm:$0xff]   ;;  %vm1067_vm2 = vmmov 0  }
  0x18   : > { %892 = vmatpush3.bf16.msra.mxu1 %v998_v1  ;;  %s831_s22 = sshll.u32 %s292_s19, 3  ;;  %v832_v33 = vld [vmem:[%s1310_s2] ss:$0 sm:$0xff] }
  0x19   : > { %893 = vmatprep.subr.bf16.mxu1 %v999_v2  ;;  %s1174_s25 = scalar_lea.vmem %s1308_s0, %s831_s22 }
  0x1a   : > { %v301_v4 = vld [vmem:[%s1174_s25] sm:$0xff]  ;;  %v302_v5 = vld [vmem:[%s1174_s25 + $0x8] sm:$0xff]  ;;  %v303_v6 = vld [vmem:[%s1174_s25 + $0x10] sm:$0xff] }
  0x1b   : > { %v317_v7 = vpack.c.bf16 %v302_v5, %v301_v4  ;;  %v304_v8 = vld [vmem:[%s1174_s25 + $0x18] sm:$0xff]  ;;  %v305_v9 = vld [vmem:[%s1174_s25 + $0x20] sm:$0xff]  ;;  %v306_v10 = vld [vmem:[%s1174_s25 + $0x28] sm:$0xff] }
  0x1c   : > { %894 = vmatpush3.bf16.msra.mxu1 %v999_v2  ;;  %v318_v11 = vpack.c.bf16 %v304_v8, %v303_v6  ;;  %v319_v12 = vpack.c.bf16 %v306_v10, %v305_v9  ;;  %v307_v14 = vld [vmem:[%s1174_s25 + $0x30] sm:$0xff]  ;;  %v308_v15 = vld [vmem:[%s1174_s25 + $0x38] sm:$0xff]  ;;  %v309_v16 = vld [vmem:[%s1174_s25 + $0x40] sm:$0xff] }
  0x1d   : > { %911 = vmatprep.subr.bf16.mxu1 %v1000_v3  ;;  %895 = vmatprep.mubr.msk.bf16.mxu1 %vm348_vm0, %v317_v7  ;;  %v310_v17 = vld [vmem:[%s1174_s25 + $0x48] sm:$0xff]  ;;  %v320_v19 = vpack.c.bf16 %v308_v15, %v307_v14  ;;  %v311_v21 = vld [vmem:[%s1174_s25 + $0x50] sm:$0xff]  ;;  %v312_v22 = vld [vmem:[%s1174_s25 + $0x58] sm:$0xff] }
  0x1e   : > { %v321_v20 = vpack.c.bf16 %v310_v17, %v309_v16  ;;  %v313_v23 = vld [vmem:[%s1174_s25 + $0x60] sm:$0xff]  ;;  %v314_v24 = vld [vmem:[%s1174_s25 + $0x68] sm:$0xff]  ;;  %v322_v25 = vpack.c.bf16 %v312_v22, %v311_v21  ;;  %v315_v27 = vld [vmem:[%s1174_s25 + $0x70] sm:$0xff] }
  0x1f   : > { %896 = vmatmul.mubr.msk.bf16.vlgmr.msra.gmra.mxu1 %vm348_vm0, %v318_v11  ;;  %v323_v26 = vpack.c.bf16 %v314_v24, %v313_v23  ;;  %v316_v28 = vld [vmem:[%s1174_s25 + $0x78] sm:$0xff]  ;;  %v1066_v24 = vmov 0.0   ;;  %s771_s25 = sshll.u32 %s285_s24, 4  ;;  %s1269_s25 = int_to_ptr.vmem [resolvable:$true] %s771_s25 }
  0x20   : > { %899 = vmatprep.mubr.msk.bf16.mxu1 %vm348_vm0, %v319_v12  ;;  %912 = vmatpush3.bf16.msra.mxu1 %v1000_v3  ;;  %v324_v29 = vpack.c.bf16 %v316_v28, %v315_v27  ;;  %v1225_v28 = vld [vmem:[%s1312_s4] ss:$0 sm:$0xff]  ;;  %s1004_s14 = scalar_lea.vmem %s1269_s25, 16  ;;  %p1011_p0 = scmp.lt.s32.totalorder %s1269_s25, %s1009_s17 }
  0x21   : > { %913 = vmatprep.subr.bf16.mxu1 %v1001_v13  ;;  %935 = vmatprep.subr.bf16.mxu0 %v1066_v24  ;;  %p1005_p11 = scmp.ne.s32.totalorder %s1269_s25, %s1004_s14  ;;  %p1012_p1 = scmp.lt.s32.totalorder %s1010_s18, %s1004_s14 }
  0x22   : > { %951 = vmatprep.mubr.msk.bf16.mxu0 %vm1067_vm2, %v1066_v24 }
  0x23   : > { %p1006_p12 = pnand %p1005_p11, %p1148_p5  ;;  %p1013_p2 = por %p1012_p1, %p1011_p0 }
  0x24   : > { %914 = vmatpush3.bf16.msra.mxu1 %v1001_v13 }
  0x25   : > { %915 = vmatprep.subr.bf16.mxu1 %v1002_v18  ;;  %p1007_p13 = pneg %p1006_p12 }
  0x27   : > { %900 = vmatmul.mubr.msk.bf16.gmra.mxu1 %vm348_vm0, %v320_v19  ;;  %p1014_p3 = pnand %p1013_p2, %p1007_p13 }
  0x28   : > { %903 = vmatprep.mubr.msk.bf16.mxu1 %vm348_vm0, %v321_v20  ;;  %916 = vmatpush3.bf16.msra.mxu1 %v1002_v18 }
  0x29   : > { %917 = vmatprep.subr.bf16.mxu1 %v1003_v30 }
  0x2c   : > { %918 = vmatpush3.bf16.msra.mxu1 %v1003_v30 }
  0x2f   : > { %904 = vmatmul.mubr.msk.bf16.gmra.mxu1 %vm348_vm0, %v322_v25  ;;  %v680_v25 = vld [vmem:[#allocation2] sm:$0x1] }
  0x30   : > { %907 = vmatprep.mubr.msk.bf16.mxu1 %vm348_vm0, %v323_v26  ;;  %v1068_v26 = vmov 0  }
  0x31   : > { %997 = vset.pattern.permute.xlu0 %v1068_v26 }
  0x32   : > { %683 = vperm.xlu0 %997, %v680_v25  }
  0x37   : > { %908 = vmatmul.mubr.msk.bf16.gmra.mxu1 %vm348_vm0, %v324_v29 }
  0xdf   : > { %v897_v31 = vpop.f32.mrf.mxu1 }
  0xe0   : > { %v416_v37 = vadd.f32 %v897_v31, %v832_v33 }
  0xe1   : > { %v407_v32 = vpop.f32.mrf.mxu1 }
  0xe2   : > { %v408_v35 = vadd.f32 %v832_v33, %v407_v32  ;;  %v472_v44 = vmax.f32 %v416_v37, 0.0 }
  0xe3   : > { %v898_v34 = vpop.f32.mrf.mxu1 }
  0xe4   : > { %v419_v36 = vadd.f32 %v898_v34, %v832_v33  ;;  %v470_v42 = vmax.f32 %v408_v35, 0.0 }
  0xe5   : > { %v410_v38 = vpop.f32.mrf.mxu1 }
  0xe6   : > { %v411_v39 = vadd.f32 %v832_v33, %v410_v38  ;;  %v473_v40 = vmax.f32 %v419_v36, 0.0 }
  0xe7   : > { %v901_v41 = vpop.f32.mrf.mxu1 }
  0xe8   : > { %v471_v43 = vmax.f32 %v411_v39, 0.0  ;;  %v487_v47 = vpack.c.bf16 %v473_v40, %v472_v44  ;;  %v432_v51 = vadd.f32 %v901_v41, %v832_v33 }
  0xe9   : > { %v423_v45 = vpop.f32.mrf.mxu1 }
  0xea   : > { %v486_v46 = vpack.c.bf16 %v471_v43, %v470_v42  ;;  %v424_v49 = vadd.f32 %v832_v33, %v423_v45  ;;  %v476_v58 = vmax.f32 %v432_v51, 0.0 }
  0xeb   : > { %v902_v48 = vpop.f32.mrf.mxu1 }
  0xec   : > { %v435_v50 = vadd.f32 %v902_v48, %v832_v33  ;;  %919 = vmatprep.mubr.msk.bf16.mxu1 %vm533_vm1, %v486_v46  ;;  %v474_v56 = vmax.f32 %v424_v49, 0.0 }
  0xed   : > { %v426_v52 = vpop.f32.mrf.mxu1  ;;  %920 = vmatmul.mubr.msk.bf16.vlgmr.msra.gmra.mxu1 %vm533_vm1, %v487_v47 }
  0xee   : > { %v427_v53 = vadd.f32 %v832_v33, %v426_v52  ;;  %v477_v54 = vmax.f32 %v435_v50, 0.0 }
  0xef   : > { %v905_v55 = vpop.f32.mrf.mxu1 }
  0xf0   : > { %v475_v57 = vmax.f32 %v427_v53, 0.0  ;;  %v489_v61 = vpack.c.bf16 %v477_v54, %v476_v58  ;;  %v448_v1 = vadd.f32 %v905_v55, %v832_v33 }
  0xf1   : > { %v439_v59 = vpop.f32.mrf.mxu1 }
  0xf2   : > { %v488_v60 = vpack.c.bf16 %v475_v57, %v474_v56  ;;  %v440_v63 = vadd.f32 %v832_v33, %v439_v59  ;;  %v480_v8 = vmax.f32 %v448_v1, 0.0 }
  0xf3   : > { %v906_v62 = vpop.f32.mrf.mxu1 }
  0xf4   : > { %v451_v0 = vadd.f32 %v906_v62, %v832_v33  ;;  %923 = vmatprep.mubr.msk.bf16.mxu1 %vm533_vm1, %v488_v60  ;;  %v478_v6 = vmax.f32 %v440_v63, 0.0 }
  0xf5   : > { %v442_v2 = vpop.f32.mrf.mxu1  ;;  %924 = vmatmul.mubr.msk.bf16.gmra.mxu1 %vm533_vm1, %v489_v61 }
  0xf6   : > { %v443_v3 = vadd.f32 %v832_v33, %v442_v2  ;;  %v481_v4 = vmax.f32 %v451_v0, 0.0 }
  0xf7   : > { %v909_v5 = vpop.f32.mrf.mxu1 }
  0xf8   : > { %v479_v7 = vmax.f32 %v443_v3, 0.0  ;;  %v491_v11 = vpack.c.bf16 %v481_v4, %v480_v8  ;;  %v464_v15 = vadd.f32 %v909_v5, %v832_v33 }
  0xf9   : > { %v455_v9 = vpop.f32.mrf.mxu1 }
  0xfa   : > { %v490_v10 = vpack.c.bf16 %v479_v7, %v478_v6  ;;  %v456_v13 = vadd.f32 %v832_v33, %v455_v9  ;;  %v484_v21 = vmax.f32 %v464_v15, 0.0 }
  0xfb   : > { %v910_v12 = vpop.f32.mrf.mxu1 }
  0xfc   : > { %v467_v14 = vadd.f32 %v910_v12, %v832_v33  ;;  %927 = vmatprep.mubr.msk.bf16.mxu1 %vm533_vm1, %v490_v10  ;;  %v482_v19 = vmax.f32 %v456_v13, 0.0 }
  0xfd   : > { %v458_v16 = vpop.f32.mrf.mxu1  ;;  %928 = vmatmul.mubr.msk.bf16.gmra.mxu1 %vm533_vm1, %v491_v11 }
  0xfe   : > { %v459_v17 = vadd.f32 %v832_v33, %v458_v16  ;;  %v485_v18 = vmax.f32 %v467_v14, 0.0 }
 0x100   : > { %v483_v20 = vmax.f32 %v459_v17, 0.0  ;;  %v493_v23 = vpack.c.bf16 %v485_v18, %v484_v21 }
 0x102   : > { %v492_v22 = vpack.c.bf16 %v483_v20, %v482_v19 }
 0x104   : > { %931 = vmatprep.mubr.msk.bf16.mxu1 %vm533_vm1, %v492_v22 }
 0x105   : > { %932 = vmatmul.mubr.msk.bf16.gmra.mxu1 %vm533_vm1, %v493_v23 }
 0x1ad   : > { %v921_v27 = vpop.f32.mrf.mxu1 }
 0x1ae   : > { %v601_v30 = vadd.f32 %v921_v27, %v1225_v28 }
 0x1af   : > { %v592_v29 = vpop.f32.mrf.mxu1 }
 0x1b0   : > { %v593_v32 = vadd.f32 %v1225_v28, %v592_v29  ;;  %v657_v35 = vmax.f32 %v601_v30, 0.0  ;;  %v679_v29 = vld [vmem:[%s1313_s5] sm:$0x1]  ;;  %v686_v30 = vlaneseq }
 0x1b1   : > { %v922_v31 = vpop.f32.mrf.mxu1 }
 0x1b2   : > { %v604_v33 = vadd.f32 %v922_v31, %v1225_v28  ;;  %v655_v39 = vmax.f32 %v593_v32, 0.0  ;;  %v687_v31 = vshrl.u32 %v686_v30, 7 }
 0x1b3   : > { %v595_v34 = vpop.f32.mrf.mxu1 }
 0x1b4   : > { %v658_v36 = vmax.f32 %v604_v33, 0.0  ;;  %v596_v37 = vadd.f32 %v1225_v28, %v595_v34  ;;  %v688_v32 = vsub.s32 0, %v687_v31  ;;  %v684_v33 = vpop.permute.xlu0 %683 }
 0x1b5   : > { %v925_v38 = vpop.f32.mrf.mxu1 }
 0x1b6   : > { %v672_v40 = vpack.c.bf16 %v658_v36, %v657_v35  ;;  %v656_v41 = vmax.f32 %v596_v37, 0.0  ;;  %v617_v14 = vadd.f32 %v925_v38, %v1225_v28  ;;  %v689_v34 = vrot.slane %v684_v33, %v688_v32 }
 0x1b7   : > { %v608_v42 = vpop.f32.mrf.mxu1 }
 0x1b8   : > { %v671_v43 = vpack.c.bf16 %v656_v41, %v655_v39  ;;  %v661_v17 = vmax.f32 %v617_v14, 0.0  ;;  %v609_v20 = vadd.f32 %v1225_v28, %v608_v42  ;;  %v697_v27 = vsel %vm533_vm1, %v672_v40, 0 }
 0x1b9   : > { %v926_v44 = vpop.f32.mrf.mxu1 }
 0x1ba   : > { %v620_v12 = vadd.f32 %v926_v44, %v1225_v28  ;;  %v659_v23 = vmax.f32 %v609_v20, 0.0 }
 0x1bb   : > { %v611_v45 = vpop.f32.mrf.mxu1 }
 0x1bc   : > { %v662_v15 = vmax.f32 %v620_v12, 0.0  ;;  %v612_v19 = vadd.f32 %v1225_v28, %v611_v45 }
 0x1bd   : > { %v929_v46 = vpop.f32.mrf.mxu1 }
 0x1be   : > { %v633_v2 = vadd.f32 %v929_v46, %v1225_v28  ;;  %v674_v18 = vpack.c.bf16 %v662_v15, %v661_v17  ;;  %v660_v21 = vmax.f32 %v612_v19, 0.0 }
 0x1bf   : > { %v624_v47 = vpop.f32.mrf.mxu1 }
 0x1c0   : > { %v665_v5 = vmax.f32 %v633_v2, 0.0  ;;  %v625_v8 = vadd.f32 %v1225_v28, %v624_v47  ;;  %v703_v22 = vsel %vm533_vm1, %v674_v18, 0  ;;  %v673_v25 = vpack.c.bf16 %v660_v21, %v659_v23 }
 0x1c1   : > { %v930_v48 = vpop.f32.mrf.mxu1 }
 0x1c2   : > { %v636_v0 = vadd.f32 %v930_v48, %v1225_v28  ;;  %v663_v11 = vmax.f32 %v625_v8, 0.0  ;;  %v700_v26 = vsel %vm533_vm1, %v673_v25, 0 }
 0x1c3   : > { %v627_v49 = vpop.f32.mrf.mxu1 }
 0x1c4   : > { %v666_v3 = vmax.f32 %v636_v0, 0.0  ;;  %v628_v7 = vadd.f32 %v1225_v28, %v627_v49 }
 0x1c5   : > { %v933_v50 = vpop.f32.mrf.mxu1 }
 0x1c6   : > { %v649_v52 = vadd.f32 %v933_v50, %v1225_v28  ;;  %v676_v6 = vpack.c.bf16 %v666_v3, %v665_v5  ;;  %v664_v9 = vmax.f32 %v628_v7, 0.0 }
 0x1c7   : > { %v640_v51 = vpop.f32.mrf.mxu1 }
 0x1c8   : > { %v669_v56 = vmax.f32 %v649_v52, 0.0  ;;  %v641_v59 = vadd.f32 %v1225_v28, %v640_v51  ;;  %v709_v10 = vsel %vm533_vm1, %v676_v6, 0  ;;  %v675_v13 = vpack.c.bf16 %v664_v9, %v663_v11 }
 0x1c9   : > { %v934_v53 = vpop.f32.mrf.mxu1 }
 0x1ca   : > { %v652_v54 = vadd.f32 %v934_v53, %v1225_v28  ;;  %v667_v63 = vmax.f32 %v641_v59, 0.0  ;;  %v706_v16 = vsel %vm533_vm1, %v675_v13, 0 }
 0x1cb   : > { %v643_v55 = vpop.f32.mrf.mxu1 }
 0x1cc   : > { %v670_v57 = vmax.f32 %v652_v54, 0.0  ;;  %v644_v58 = vadd.f32 %v1225_v28, %v643_v55  ;;  %v694_v28 = vsel %vm533_vm1, %v671_v43, 0 }
 0x1ce   : > { %v678_v60 = vpack.c.bf16 %v670_v57, %v669_v56  ;;  %v668_v61 = vmax.f32 %v644_v58, 0.0 }
 0x1d0   : > { %v715_v62 = vsel %vm533_vm1, %v678_v60, 0  ;;  %v677_v1 = vpack.c.bf16 %v668_v61, %v667_v63 }
 0x1d1   : > { %936 = vmatpush3.bf16.xpose.msra.mxu0 %v715_v62 }
 0x1d2   : > { %937 = vmatprep.subr.bf16.mxu0 %v1066_v24  ;;  %v712_v4 = vsel %vm533_vm1, %v677_v1, 0 }
 0x1d9   : > { %938 = vmatpush3.bf16.xpose.msra.mxu0 %v712_v4 }
 0x1da   : > { %939 = vmatprep.subr.bf16.mxu0 %v1066_v24 }
 0x1e1   : > { %940 = vmatpush3.bf16.xpose.msra.mxu0 %v709_v10 }
 0x1e2   : > { %941 = vmatprep.subr.bf16.mxu0 %v1066_v24 }
 0x1e9   : > { %942 = vmatpush3.bf16.xpose.msra.mxu0 %v706_v16 }
 0x1ea   : > { %943 = vmatprep.subr.bf16.mxu0 %v1066_v24 }
 0x1f1   : > { %944 = vmatpush3.bf16.xpose.msra.mxu0 %v703_v22 }
 0x1f2   : > { %945 = vmatprep.subr.bf16.mxu0 %v1066_v24 }
 0x1f9   : > { %946 = vmatpush3.bf16.xpose.msra.mxu0 %v700_v26 }
 0x1fa   : > { %947 = vmatprep.subr.bf16.mxu0 %v1066_v24 }
 0x201   : > { %948 = vmatpush3.bf16.xpose.msra.mxu0 %v697_v27 }
 0x202   : > { %949 = vmatprep.subr.bf16.mxu0 %v1066_v24 }
 0x209   : > { %950 = vmatpush3.bf16.xpose.msra.mxu0 %v694_v28 }
 0x210   : > { %952 = vmatmul.mubr.msk.bf16.vlgmr.msra.gmra.mxu0 %vm533_vm1, %v679_v29 }
 0x2d0   : > { %v751_v35 = vpop.f32.mrf.mxu0 }
 0x2d1   : > { %v752_v24 = vadd.f32 %v751_v35, %v689_v34 }
 0x2d2   : > { %v953_v36 = vpop.f32.mrf.mxu0 }
 0x2d3   : > { %757 = vst [vmem:[%s285_s24] sm:$0x1] %v752_v24 }
 0x2d4   : > { %v754_v37 = vpop.f32.mrf.mxu0 }
 0x2d5   : > { %1017 = shalt.err (!%p1014_p3)
}
 0x2d6   : > { %s1018_s16 = scalar_lea.hbm %s1267_s9, 16  ;;  %s1022_s21 = scalar_lea.hbm %s1315_s7, 32 }
 0x2d7   : > { %p1019_p4 = scmp.ne.s32.totalorder %s1267_s9, %s1018_s16  ;;  %p1023_p9 = scmp.lt.s32.totalorder %s1267_s9, %s1315_s7 }
 0x2d8   : > { %p1024_p10 = scmp.lt.s32.totalorder %s1022_s21, %s1018_s16 }
 0x2d9   : > { %p1020_p7 = pnand %p1019_p4, %p1148_p5 }
 0x2da   : > { %p1025_p11 = por %p1024_p10, %p1023_p9 }
 0x2db   : > { %p1021_p8 = pneg %p1020_p7 }
 0x2dd   : > { %p1026_p12 = pnand %p1025_p11, %p1021_p8 }
 0x2df   : > { %1029 = shalt.err (!%p1026_p12)
}
 0x2e0   : > { %955 = dma.vmem_to_hbm [thread:$0]  (%p1148_p5), %s1269_s25, 16, %s1267_s9, %s759_s10   ;;  %v954_v38 = vpop.f32.mrf.mxu0 }
 0x2e1 PF: > { %p961_p13 = scmp.ge.s32.totalorder %s1064_s29, 2  ;;  %s783_s24 = sand.u32 1, %s1052_s26  }
 0x2e2   : > { %s784_s6 = scalar_lea.sflag [#allocation4], %s783_s24 }
 0x2e3   : > { %p958_p0 = pnand %p961_p13, %p1152_p6 }
 0x2e5   : > { %p959_p1 = pneg %p958_p0 }
 0x2e7   : > { %1047 = dma.done.wait (%p959_p1), %s784_s6, 16  }
 0x2e8   : > { %1049 = vsyncadd (%p959_p1), %s784_s6, 4294967280  ;;  %p19_p2 = scmp.ge.s32.totalorder %s1136_s8, 4   ;;  %s1318_s26 = smov %s1056_s27 }
 0x2e9   : > { %s1319_s27 = smov %s1060_s28  ;;  %s1320_s28 = smov %s1146_s11 }
 0x2ea   : > { %s1321_s29 = smov %s1136_s8  ;;  %21 = sbr.rel (!%p19_p2) target bundleno = 6 (0x6), region = 83 }
 0x2ef   :  { %788 = vsyncpa [#allocation4], 1 }
 0x2f0   :  { %790 = vsyncpa [#allocation4 + $0x1], 1 }

</bundles_post_ra>
